<compile_context>
chip_gen: v7x
topology: tpu7x:2x2x1
jax: 0.10.0
libtpu: 0.0.40
codegen_flags: <defaults>
</compile_context>

<pallas_src>
import functools

import jax
import jax.numpy as jnp
from jax import lax
from jax.experimental import pallas as pl
from jax.experimental.pallas import tpu as pltpu

EPS = 1e-5  # BatchNorm2d default eps


# ---------------------------------------------------------------------------
# Fused kernel: in-kernel im2col (shift+mask) + conv + bias + ReLU
#               + batch-stats + BN apply.
# ---------------------------------------------------------------------------
def fused_conv_relu_bn_kernel(x_ref, w_ref, bgb_ref, o_ref, *,
                              n_imgs, cin, cout, height, width, inv_count):
    # x_ref:   (N, Cin, HW + 2*(W+1))  flattened input, zero-padded by (W+1)
    #          on each side of the flat spatial axis (realizes the H padding
    #          rows + one extra element so every 3x3 tap is a static offset).
    # w_ref:   (9, Cout, Cin)  one (Cout, Cin) weight slab per 3x3 tap.
    # bgb_ref: (3, Cout, 1)    packed [conv bias, bn gamma, bn beta].
    # o_ref:   (N, Cout, HW)   lane-dense output (HW multiple of 128).
    hw = height * width

    # Lane masks killing the W-boundary wrap of the left/right taps.
    col = lax.broadcasted_iota(jnp.int32, (cin, hw), 1) % width
    left_ok = col != 0                 # kw == 0 taps invalid at w == 0
    right_ok = col != (width - 1)      # kw == 2 taps invalid at w == W-1

    bias = bgb_ref[0]                  # (Cout, 1)
    gamma = bgb_ref[1]
    beta = bgb_ref[2]

    ys = []
    s = jnp.zeros((cout, 1), jnp.float32)
    ssq = jnp.zeros((cout, 1), jnp.float32)

    for n in range(n_imgs):            # static loop, traced once (N is tiny)
        acc = jnp.zeros((cout, hw), jnp.float32)
        for kh in range(3):
            for kw in range(3):
                d = kh * width + kw    # static flat offset of this tap
                slab = x_ref[n, :, pl.ds(d, hw)]          # (Cin, HW)
                if kw == 0:
                    slab = jnp.where(left_ok, slab, 0.0)
                elif kw == 2:
                    slab = jnp.where(right_ok, slab, 0.0)
                wk = w_ref[kh * 3 + kw]                   # (Cout, Cin)
                acc = acc + jnp.dot(wk, slab,
                                    preferred_element_type=jnp.float32)
        y = jnp.maximum(acc + bias, 0.0)                  # conv bias + ReLU (f32)
        ys.append(y)
        # Training-mode BatchNorm statistics over (N, H, W) == lanes + images.
        s = s + jnp.sum(y, axis=1, keepdims=True)
        ssq = ssq + jnp.sum(y * y, axis=1, keepdims=True)

    mean = s * inv_count
    var = jnp.maximum(ssq * inv_count - mean * mean, 0.0)  # biased var, clamped
    inv_std = lax.rsqrt(var + EPS)
    scale = gamma * inv_std
    shift = beta - mean * scale

    for n in range(n_imgs):
        o_ref[n] = ys[n] * scale + shift                  # (Cout, HW) unmasked vst


# ---------------------------------------------------------------------------
# Wrapper: only free/tiny layout plumbing in JAX (no im2col, no transpose of
# the output).
# ---------------------------------------------------------------------------
def conv_relu_bn_forward(x_nchw, weight, bias, gamma, beta):
    """x_nchw: (N, Cin, H, W) f32; weight: (Cout, Cin, 3, 3); bias/gamma/beta: (Cout,)"""
    N, Cin, H, W = x_nchw.shape
    Cout = weight.shape[0]
    HW = H * W
    padlen = HW + 2 * (W + 1)

    # Contiguous reshape + small zero pad (same size as the input, no 9x slab).
    x_flat = jnp.pad(x_nchw.reshape(N, Cin, HW),
                     ((0, 0), (0, 0), (W + 1, W + 1)))    # (N, Cin, padlen)

    # (Cout, Cin, 3, 3) -> (9, Cout, Cin): one weight slab per tap (1 KB total).
    w_taps = jnp.transpose(weight, (2, 3, 0, 1)).reshape(9, Cout, Cin)

    # Pack the three per-channel vectors into one input (one DMA instead of 3).
    bgb = jnp.stack([bias, gamma, beta]).reshape(3, Cout, 1)

    kernel = functools.partial(
        fused_conv_relu_bn_kernel,
        n_imgs=N, cin=Cin, cout=Cout, height=H, width=W,
        inv_count=float(1.0 / (N * HW)))

    out_flat = pl.pallas_call(
        kernel,
        out_shape=jax.ShapeDtypeStruct((N, Cout, HW), jnp.float32),
        grid_spec=pltpu.PrefetchScalarGridSpec(
            num_scalar_prefetch=0,
            grid=(1,),
            in_specs=[
                pl.BlockSpec((N, Cin, padlen), lambda i: (0, 0, 0)),
                pl.BlockSpec((9, Cout, Cin), lambda i: (0, 0, 0)),
                pl.BlockSpec((3, Cout, 1), lambda i: (0, 0, 0)),
            ],
            out_specs=pl.BlockSpec((N, Cout, HW), lambda i: (0, 0, 0)),
        ),
        compiler_params=pltpu.CompilerParams(
            dimension_semantics=("arbitrary",)),
    )(x_flat, w_taps, bgb)

    # (N, Cout, H*W) -> (N, Cout, H, W): contiguous reshape, no transpose.
    return out_flat.reshape(N, Cout, H, W)


# ---------------------------------------------------------------------------
# Pure-JAX reference (verification only).
# ---------------------------------------------------------------------------
def reference_forward(x_nchw, weight, bias, gamma, beta):
    y = lax.conv_general_dilated(
        x_nchw, weight, window_strides=(1, 1), padding=((1, 1), (1, 1)),
        dimension_numbers=("NCHW", "OIHW", "NCHW"))
    y = y + bias[None, :, None, None]
    y = jnp.maximum(y, 0.0)
    mean = jnp.mean(y, axis=(0, 2, 3), keepdims=True)
    var = jnp.mean((y - mean) ** 2, axis=(0, 2, 3), keepdims=True)
    return (y - mean) / jnp.sqrt(var + EPS) * gamma[None, :, None, None] \
        + beta[None, :, None, None]


if __name__ == "__main__":
    # Small shapes consistent with the module: Conv(in_features=4, out_features=8)
    N, Cin, Cout, H, W = 2, 4, 8, 16, 16

    key = jax.random.PRNGKey(0)
    kx, kw_, kb, kg, kbt = jax.random.split(key, 5)

    x = jax.random.normal(kx, (N, Cin, H, W), dtype=jnp.float32)

    # Deterministic PyTorch-style init: U(-k, k), k = 1/sqrt(fan_in)
    fan_in = Cin * 3 * 3
    k = 1.0 / float(fan_in) ** 0.5
    weight = jax.random.uniform(kw_, (Cout, Cin, 3, 3), jnp.float32, -k, k)
    bias = jax.random.uniform(kb, (Cout,), jnp.float32, -k, k)
    # Non-trivial affine params to exercise the BN apply path.
    gamma = jax.random.uniform(kg, (Cout,), jnp.float32, 0.5, 1.5)
    beta = jax.random.uniform(kbt, (Cout,), jnp.float32, -0.5, 0.5)

    out = conv_relu_bn_forward(x, weight, bias, gamma, beta)
    out = jax.block_until_ready(out)

    ref = reference_forward(x, weight, bias, gamma, beta)
    assert out.shape == (N, Cout, H, W)
    assert jnp.allclose(out, ref, atol=1e-4, rtol=1e-4), \
        f"max abs err = {jnp.max(jnp.abs(out - ref))}"

    print("KERNEL_OK")
</pallas_src>

<mosaic_0001>
module attributes {stable_mosaic.version = 11 : i64} {
  func.func @fused_conv_relu_bn_kernel(%arg0: i32, %arg1: memref<2x4x290xf32, #tpu.memory_space<vmem>>, %arg2: memref<9x8x4xf32, #tpu.memory_space<vmem>>, %arg3: memref<3x8x1xf32, #tpu.memory_space<vmem>>, %arg4: memref<2x8x256xf32, #tpu.memory_space<vmem>>) attributes {dimension_semantics = [#tpu.dimension_semantics<arbitrary>], iteration_bounds = array<i64: 1>, scalar_prefetch = 0 : i64, scratch_operands = 0 : i64, tpu.core_type = #tpu.core_type<tc>, window_params = [{pipeline_mode = #tpu.pipeline_mode<synchronous>, transform_indices = @transform_0, window_bounds = array<i64: 2, 4, 290>}, {pipeline_mode = #tpu.pipeline_mode<synchronous>, transform_indices = @transform_1, window_bounds = array<i64: 9, 8, 4>}, {pipeline_mode = #tpu.pipeline_mode<synchronous>, transform_indices = @transform_2, window_bounds = array<i64: 3, 8, 1>}, {pipeline_mode = #tpu.pipeline_mode<synchronous>, transform_indices = @transform_3, window_bounds = array<i64: 2, 8, 256>}]} {
    %0 = tpu.iota {dimensions = array<i32: 1>} : vector<4x256xi32>
    %c16_i32 = arith.constant 16 : i32
    %c0_i32 = arith.constant 0 : i32
    %1 = arith.cmpi eq, %c16_i32, %c0_i32 : i32
    %c1_i32 = arith.constant 1 : i32
    %2 = arith.select %1, %c1_i32, %c16_i32 : i32
    %3 = vector.broadcast %2 : i32 to vector<4x256xi32>
    %4 = arith.remsi %0, %3 : vector<4x256xi32>
    %c0_i32_0 = arith.constant 0 : i32
    %5 = vector.broadcast %c0_i32_0 : i32 to vector<4x256xi32>
    %6 = arith.cmpi ne, %4, %5 : vector<4x256xi32>
    %c0_i32_1 = arith.constant 0 : i32
    %7 = vector.broadcast %c0_i32_1 : i32 to vector<4x256xi32>
    %8 = arith.cmpi slt, %4, %7 : vector<4x256xi32>
    %c0_i32_2 = arith.constant 0 : i32
    %9 = arith.cmpi slt, %2, %c0_i32_2 : i32
    %10 = vector.broadcast %9 : i1 to vector<4x256xi1>
    %11 = vector.broadcast %10 : vector<4x256xi1> to vector<4x256xi1>
    %12 = arith.xori %8, %11 : vector<4x256xi1>
    %13 = arith.andi %12, %6 : vector<4x256xi1>
    %14 = vector.broadcast %2 : i32 to vector<4x256xi32>
    %15 = arith.addi %4, %14 : vector<4x256xi32>
    %16 = arith.select %13, %15, %4 : vector<4x256xi1>, vector<4x256xi32>
    %c0_i32_3 = arith.constant 0 : i32
    %17 = vector.broadcast %c0_i32_3 : i32 to vector<4x256xi32>
    %18 = arith.cmpi ne, %16, %17 : vector<4x256xi32>
    %c15_i32 = arith.constant 15 : i32
    %19 = vector.broadcast %c15_i32 : i32 to vector<4x256xi32>
    %20 = arith.cmpi ne, %16, %19 : vector<4x256xi32>
    %c0 = arith.constant 0 : index
    %c0_4 = arith.constant 0 : index
    %c0_5 = arith.constant 0 : index
    %21 = vector.load %arg3[%c0, %c0_4, %c0_5] : memref<3x8x1xf32, #tpu.memory_space<vmem>>, vector<1x8x1xf32>
    %22 = vector.shape_cast %21 : vector<1x8x1xf32> to vector<8x1xf32>
    %c1 = arith.constant 1 : index
    %c0_6 = arith.constant 0 : index
    %c0_7 = arith.constant 0 : index
    %23 = vector.load %arg3[%c1, %c0_6, %c0_7] : memref<3x8x1xf32, #tpu.memory_space<vmem>>, vector<1x8x1xf32>
    %24 = vector.shape_cast %23 : vector<1x8x1xf32> to vector<8x1xf32>
    %c2 = arith.constant 2 : index
    %c0_8 = arith.constant 0 : index
    %c0_9 = arith.constant 0 : index
    %25 = vector.load %arg3[%c2, %c0_8, %c0_9] : memref<3x8x1xf32, #tpu.memory_space<vmem>>, vector<1x8x1xf32>
    %26 = vector.shape_cast %25 : vector<1x8x1xf32> to vector<8x1xf32>
    %cst = arith.constant 0.000000e+00 : f32
    %27 = vector.broadcast %cst : f32 to vector<8x1xf32>
    %cst_10 = arith.constant 0.000000e+00 : f32
    %28 = vector.broadcast %cst_10 : f32 to vector<8x1xf32>
    %cst_11 = arith.constant 0.000000e+00 : f32
    %29 = vector.broadcast %cst_11 : f32 to vector<8x256xf32>
    %c0_12 = arith.constant 0 : index
    %c0_13 = arith.constant 0 : index
    %c0_14 = arith.constant 0 : index
    %30 = vector.load %arg1[%c0_12, %c0_13, %c0_14] : memref<2x4x290xf32, #tpu.memory_space<vmem>>, vector<1x4x256xf32>
    %31 = vector.shape_cast %30 : vector<1x4x256xf32> to vector<4x256xf32>
    %cst_15 = arith.constant 0.000000e+00 : f32
    %32 = vector.broadcast %cst_15 : f32 to vector<4x256xf32>
    %33 = arith.select %18, %31, %32 : vector<4x256xi1>, vector<4x256xf32>
    %c0_16 = arith.constant 0 : index
    %c0_17 = arith.constant 0 : index
    %c0_18 = arith.constant 0 : index
    %34 = vector.load %arg2[%c0_16, %c0_17, %c0_18] : memref<9x8x4xf32, #tpu.memory_space<vmem>>, vector<1x8x4xf32>
    %35 = vector.shape_cast %34 : vector<1x8x4xf32> to vector<8x4xf32>
    %cst_19 = arith.constant dense<0.000000e+00> : vector<8x256xf32>
    %36 = tpu.matmul %35, %33, %cst_19 {dimension_numbers = #tpu.dot_dimension_numbers<[1], [0], [0], [1], [0, 0, 1, 1], [], []>} : vector<8x4xf32>, vector<4x256xf32>, vector<8x256xf32> -> vector<8x256xf32>
    %37 = arith.addf %29, %36 : vector<8x256xf32>
    %c0_20 = arith.constant 0 : index
    %c0_21 = arith.constant 0 : index
    %c1_22 = arith.constant 1 : index
    %38 = vector.load %arg1[%c0_20, %c0_21, %c1_22] : memref<2x4x290xf32, #tpu.memory_space<vmem>>, vector<1x4x256xf32>
    %39 = vector.shape_cast %38 : vector<1x4x256xf32> to vector<4x256xf32>
    %c1_23 = arith.constant 1 : index
    %c0_24 = arith.constant 0 : index
    %c0_25 = arith.constant 0 : index
    %40 = vector.load %arg2[%c1_23, %c0_24, %c0_25] : memref<9x8x4xf32, #tpu.memory_space<vmem>>, vector<1x8x4xf32>
    %41 = vector.shape_cast %40 : vector<1x8x4xf32> to vector<8x4xf32>
    %cst_26 = arith.constant dense<0.000000e+00> : vector<8x256xf32>
    %42 = tpu.matmul %41, %39, %cst_26 {dimension_numbers = #tpu.dot_dimension_numbers<[1], [0], [0], [1], [0, 0, 1, 1], [], []>} : vector<8x4xf32>, vector<4x256xf32>, vector<8x256xf32> -> vector<8x256xf32>
    %43 = arith.addf %37, %42 : vector<8x256xf32>
    %c0_27 = arith.constant 0 : index
    %c0_28 = arith.constant 0 : index
    %c2_29 = arith.constant 2 : index
    %44 = vector.load %arg1[%c0_27, %c0_28, %c2_29] : memref<2x4x290xf32, #tpu.memory_space<vmem>>, vector<1x4x256xf32>
    %45 = vector.shape_cast %44 : vector<1x4x256xf32> to vector<4x256xf32>
    %cst_30 = arith.constant 0.000000e+00 : f32
    %46 = vector.broadcast %cst_30 : f32 to vector<4x256xf32>
    %47 = arith.select %20, %45, %46 : vector<4x256xi1>, vector<4x256xf32>
    %c2_31 = arith.constant 2 : index
    %c0_32 = arith.constant 0 : index
    %c0_33 = arith.constant 0 : index
    %48 = vector.load %arg2[%c2_31, %c0_32, %c0_33] : memref<9x8x4xf32, #tpu.memory_space<vmem>>, vector<1x8x4xf32>
    %49 = vector.shape_cast %48 : vector<1x8x4xf32> to vector<8x4xf32>
    %cst_34 = arith.constant dense<0.000000e+00> : vector<8x256xf32>
    %50 = tpu.matmul %49, %47, %cst_34 {dimension_numbers = #tpu.dot_dimension_numbers<[1], [0], [0], [1], [0, 0, 1, 1], [], []>} : vector<8x4xf32>, vector<4x256xf32>, vector<8x256xf32> -> vector<8x256xf32>
    %51 = arith.addf %43, %50 : vector<8x256xf32>
    %c0_35 = arith.constant 0 : index
    %c0_36 = arith.constant 0 : index
    %c16 = arith.constant 16 : index
    %52 = vector.load %arg1[%c0_35, %c0_36, %c16] : memref<2x4x290xf32, #tpu.memory_space<vmem>>, vector<1x4x256xf32>
    %53 = vector.shape_cast %52 : vector<1x4x256xf32> to vector<4x256xf32>
    %cst_37 = arith.constant 0.000000e+00 : f32
    %54 = vector.broadcast %cst_37 : f32 to vector<4x256xf32>
    %55 = arith.select %18, %53, %54 : vector<4x256xi1>, vector<4x256xf32>
    %c3 = arith.constant 3 : index
    %c0_38 = arith.constant 0 : index
    %c0_39 = arith.constant 0 : index
    %56 = vector.load %arg2[%c3, %c0_38, %c0_39] : memref<9x8x4xf32, #tpu.memory_space<vmem>>, vector<1x8x4xf32>
    %57 = vector.shape_cast %56 : vector<1x8x4xf32> to vector<8x4xf32>
    %cst_40 = arith.constant dense<0.000000e+00> : vector<8x256xf32>
    %58 = tpu.matmul %57, %55, %cst_40 {dimension_numbers = #tpu.dot_dimension_numbers<[1], [0], [0], [1], [0, 0, 1, 1], [], []>} : vector<8x4xf32>, vector<4x256xf32>, vector<8x256xf32> -> vector<8x256xf32>
    %59 = arith.addf %51, %58 : vector<8x256xf32>
    %c0_41 = arith.constant 0 : index
    %c0_42 = arith.constant 0 : index
    %c17 = arith.constant 17 : index
    %60 = vector.load %arg1[%c0_41, %c0_42, %c17] : memref<2x4x290xf32, #tpu.memory_space<vmem>>, vector<1x4x256xf32>
    %61 = vector.shape_cast %60 : vector<1x4x256xf32> to vector<4x256xf32>
    %c4 = arith.constant 4 : index
    %c0_43 = arith.constant 0 : index
    %c0_44 = arith.constant 0 : index
    %62 = vector.load %arg2[%c4, %c0_43, %c0_44] : memref<9x8x4xf32, #tpu.memory_space<vmem>>, vector<1x8x4xf32>
    %63 = vector.shape_cast %62 : vector<1x8x4xf32> to vector<8x4xf32>
    %cst_45 = arith.constant dense<0.000000e+00> : vector<8x256xf32>
    %64 = tpu.matmul %63, %61, %cst_45 {dimension_numbers = #tpu.dot_dimension_numbers<[1], [0], [0], [1], [0, 0, 1, 1], [], []>} : vector<8x4xf32>, vector<4x256xf32>, vector<8x256xf32> -> vector<8x256xf32>
    %65 = arith.addf %59, %64 : vector<8x256xf32>
    %c0_46 = arith.constant 0 : index
    %c0_47 = arith.constant 0 : index
    %c18 = arith.constant 18 : index
    %66 = vector.load %arg1[%c0_46, %c0_47, %c18] : memref<2x4x290xf32, #tpu.memory_space<vmem>>, vector<1x4x256xf32>
    %67 = vector.shape_cast %66 : vector<1x4x256xf32> to vector<4x256xf32>
    %cst_48 = arith.constant 0.000000e+00 : f32
    %68 = vector.broadcast %cst_48 : f32 to vector<4x256xf32>
    %69 = arith.select %20, %67, %68 : vector<4x256xi1>, vector<4x256xf32>
    %c5 = arith.constant 5 : index
    %c0_49 = arith.constant 0 : index
    %c0_50 = arith.constant 0 : index
    %70 = vector.load %arg2[%c5, %c0_49, %c0_50] : memref<9x8x4xf32, #tpu.memory_space<vmem>>, vector<1x8x4xf32>
    %71 = vector.shape_cast %70 : vector<1x8x4xf32> to vector<8x4xf32>
    %cst_51 = arith.constant dense<0.000000e+00> : vector<8x256xf32>
    %72 = tpu.matmul %71, %69, %cst_51 {dimension_numbers = #tpu.dot_dimension_numbers<[1], [0], [0], [1], [0, 0, 1, 1], [], []>} : vector<8x4xf32>, vector<4x256xf32>, vector<8x256xf32> -> vector<8x256xf32>
    %73 = arith.addf %65, %72 : vector<8x256xf32>
    %c0_52 = arith.constant 0 : index
    %c0_53 = arith.constant 0 : index
    %c32 = arith.constant 32 : index
    %74 = vector.load %arg1[%c0_52, %c0_53, %c32] : memref<2x4x290xf32, #tpu.memory_space<vmem>>, vector<1x4x256xf32>
    %75 = vector.shape_cast %74 : vector<1x4x256xf32> to vector<4x256xf32>
    %cst_54 = arith.constant 0.000000e+00 : f32
    %76 = vector.broadcast %cst_54 : f32 to vector<4x256xf32>
    %77 = arith.select %18, %75, %76 : vector<4x256xi1>, vector<4x256xf32>
    %c6 = arith.constant 6 : index
    %c0_55 = arith.constant 0 : index
    %c0_56 = arith.constant 0 : index
    %78 = vector.load %arg2[%c6, %c0_55, %c0_56] : memref<9x8x4xf32, #tpu.memory_space<vmem>>, vector<1x8x4xf32>
    %79 = vector.shape_cast %78 : vector<1x8x4xf32> to vector<8x4xf32>
    %cst_57 = arith.constant dense<0.000000e+00> : vector<8x256xf32>
    %80 = tpu.matmul %79, %77, %cst_57 {dimension_numbers = #tpu.dot_dimension_numbers<[1], [0], [0], [1], [0, 0, 1, 1], [], []>} : vector<8x4xf32>, vector<4x256xf32>, vector<8x256xf32> -> vector<8x256xf32>
    %81 = arith.addf %73, %80 : vector<8x256xf32>
    %c0_58 = arith.constant 0 : index
    %c0_59 = arith.constant 0 : index
    %c33 = arith.constant 33 : index
    %82 = vector.load %arg1[%c0_58, %c0_59, %c33] : memref<2x4x290xf32, #tpu.memory_space<vmem>>, vector<1x4x256xf32>
    %83 = vector.shape_cast %82 : vector<1x4x256xf32> to vector<4x256xf32>
    %c7 = arith.constant 7 : index
    %c0_60 = arith.constant 0 : index
    %c0_61 = arith.constant 0 : index
    %84 = vector.load %arg2[%c7, %c0_60, %c0_61] : memref<9x8x4xf32, #tpu.memory_space<vmem>>, vector<1x8x4xf32>
    %85 = vector.shape_cast %84 : vector<1x8x4xf32> to vector<8x4xf32>
    %cst_62 = arith.constant dense<0.000000e+00> : vector<8x256xf32>
    %86 = tpu.matmul %85, %83, %cst_62 {dimension_numbers = #tpu.dot_dimension_numbers<[1], [0], [0], [1], [0, 0, 1, 1], [], []>} : vector<8x4xf32>, vector<4x256xf32>, vector<8x256xf32> -> vector<8x256xf32>
    %87 = arith.addf %81, %86 : vector<8x256xf32>
    %c0_63 = arith.constant 0 : index
    %c0_64 = arith.constant 0 : index
    %c34 = arith.constant 34 : index
    %88 = vector.load %arg1[%c0_63, %c0_64, %c34] : memref<2x4x290xf32, #tpu.memory_space<vmem>>, vector<1x4x256xf32>
    %89 = vector.shape_cast %88 : vector<1x4x256xf32> to vector<4x256xf32>
    %cst_65 = arith.constant 0.000000e+00 : f32
    %90 = vector.broadcast %cst_65 : f32 to vector<4x256xf32>
    %91 = arith.select %20, %89, %90 : vector<4x256xi1>, vector<4x256xf32>
    %c8 = arith.constant 8 : index
    %c0_66 = arith.constant 0 : index
    %c0_67 = arith.constant 0 : index
    %92 = vector.load %arg2[%c8, %c0_66, %c0_67] : memref<9x8x4xf32, #tpu.memory_space<vmem>>, vector<1x8x4xf32>
    %93 = vector.shape_cast %92 : vector<1x8x4xf32> to vector<8x4xf32>
    %cst_68 = arith.constant dense<0.000000e+00> : vector<8x256xf32>
    %94 = tpu.matmul %93, %91, %cst_68 {dimension_numbers = #tpu.dot_dimension_numbers<[1], [0], [0], [1], [0, 0, 1, 1], [], []>} : vector<8x4xf32>, vector<4x256xf32>, vector<8x256xf32> -> vector<8x256xf32>
    %95 = arith.addf %87, %94 : vector<8x256xf32>
    %96 = vector.broadcast %22 : vector<8x1xf32> to vector<8x256xf32>
    %97 = arith.addf %95, %96 : vector<8x256xf32>
    %cst_69 = arith.constant 0.000000e+00 : f32
    %98 = vector.broadcast %cst_69 : f32 to vector<8x256xf32>
    %99 = arith.maximumf %97, %98 : vector<8x256xf32>
    %cst_70 = arith.constant dense<0.000000e+00> : vector<8xf32>
    %100 = vector.multi_reduction <add>, %99, %cst_70 [1] : vector<8x256xf32> to vector<8xf32>
    %101 = vector.shape_cast %100 : vector<8xf32> to vector<8x1xf32>
    %102 = arith.addf %27, %101 : vector<8x1xf32>
    %103 = arith.mulf %99, %99 : vector<8x256xf32>
    %cst_71 = arith.constant dense<0.000000e+00> : vector<8xf32>
    %104 = vector.multi_reduction <add>, %103, %cst_71 [1] : vector<8x256xf32> to vector<8xf32>
    %105 = vector.shape_cast %104 : vector<8xf32> to vector<8x1xf32>
    %106 = arith.addf %28, %105 : vector<8x1xf32>
    %cst_72 = arith.constant 0.000000e+00 : f32
    %107 = vector.broadcast %cst_72 : f32 to vector<8x256xf32>
    %c1_73 = arith.constant 1 : index
    %c0_74 = arith.constant 0 : index
    %c0_75 = arith.constant 0 : index
    %108 = vector.load %arg1[%c1_73, %c0_74, %c0_75] : memref<2x4x290xf32, #tpu.memory_space<vmem>>, vector<1x4x256xf32>
    %109 = vector.shape_cast %108 : vector<1x4x256xf32> to vector<4x256xf32>
    %cst_76 = arith.constant 0.000000e+00 : f32
    %110 = vector.broadcast %cst_76 : f32 to vector<4x256xf32>
    %111 = arith.select %18, %109, %110 : vector<4x256xi1>, vector<4x256xf32>
    %c0_77 = arith.constant 0 : index
    %c0_78 = arith.constant 0 : index
    %c0_79 = arith.constant 0 : index
    %112 = vector.load %arg2[%c0_77, %c0_78, %c0_79] : memref<9x8x4xf32, #tpu.memory_space<vmem>>, vector<1x8x4xf32>
    %113 = vector.shape_cast %112 : vector<1x8x4xf32> to vector<8x4xf32>
    %cst_80 = arith.constant dense<0.000000e+00> : vector<8x256xf32>
    %114 = tpu.matmul %113, %111, %cst_80 {dimension_numbers = #tpu.dot_dimension_numbers<[1], [0], [0], [1], [0, 0, 1, 1], [], []>} : vector<8x4xf32>, vector<4x256xf32>, vector<8x256xf32> -> vector<8x256xf32>
    %115 = arith.addf %107, %114 : vector<8x256xf32>
    %c1_81 = arith.constant 1 : index
    %c0_82 = arith.constant 0 : index
    %c1_83 = arith.constant 1 : index
    %116 = vector.load %arg1[%c1_81, %c0_82, %c1_83] : memref<2x4x290xf32, #tpu.memory_space<vmem>>, vector<1x4x256xf32>
    %117 = vector.shape_cast %116 : vector<1x4x256xf32> to vector<4x256xf32>
    %c1_84 = arith.constant 1 : index
    %c0_85 = arith.constant 0 : index
    %c0_86 = arith.constant 0 : index
    %118 = vector.load %arg2[%c1_84, %c0_85, %c0_86] : memref<9x8x4xf32, #tpu.memory_space<vmem>>, vector<1x8x4xf32>
    %119 = vector.shape_cast %118 : vector<1x8x4xf32> to vector<8x4xf32>
    %cst_87 = arith.constant dense<0.000000e+00> : vector<8x256xf32>
    %120 = tpu.matmul %119, %117, %cst_87 {dimension_numbers = #tpu.dot_dimension_numbers<[1], [0], [0], [1], [0, 0, 1, 1], [], []>} : vector<8x4xf32>, vector<4x256xf32>, vector<8x256xf32> -> vector<8x256xf32>
    %121 = arith.addf %115, %120 : vector<8x256xf32>
    %c1_88 = arith.constant 1 : index
    %c0_89 = arith.constant 0 : index
    %c2_90 = arith.constant 2 : index
    %122 = vector.load %arg1[%c1_88, %c0_89, %c2_90] : memref<2x4x290xf32, #tpu.memory_space<vmem>>, vector<1x4x256xf32>
    %123 = vector.shape_cast %122 : vector<1x4x256xf32> to vector<4x256xf32>
    %cst_91 = arith.constant 0.000000e+00 : f32
    %124 = vector.broadcast %cst_91 : f32 to vector<4x256xf32>
    %125 = arith.select %20, %123, %124 : vector<4x256xi1>, vector<4x256xf32>
    %c2_92 = arith.constant 2 : index
    %c0_93 = arith.constant 0 : index
    %c0_94 = arith.constant 0 : index
    %126 = vector.load %arg2[%c2_92, %c0_93, %c0_94] : memref<9x8x4xf32, #tpu.memory_space<vmem>>, vector<1x8x4xf32>
    %127 = vector.shape_cast %126 : vector<1x8x4xf32> to vector<8x4xf32>
    %cst_95 = arith.constant dense<0.000000e+00> : vector<8x256xf32>
    %128 = tpu.matmul %127, %125, %cst_95 {dimension_numbers = #tpu.dot_dimension_numbers<[1], [0], [0], [1], [0, 0, 1, 1], [], []>} : vector<8x4xf32>, vector<4x256xf32>, vector<8x256xf32> -> vector<8x256xf32>
    %129 = arith.addf %121, %128 : vector<8x256xf32>
    %c1_96 = arith.constant 1 : index
    %c0_97 = arith.constant 0 : index
    %c16_98 = arith.constant 16 : index
    %130 = vector.load %arg1[%c1_96, %c0_97, %c16_98] : memref<2x4x290xf32, #tpu.memory_space<vmem>>, vector<1x4x256xf32>
    %131 = vector.shape_cast %130 : vector<1x4x256xf32> to vector<4x256xf32>
    %cst_99 = arith.constant 0.000000e+00 : f32
    %132 = vector.broadcast %cst_99 : f32 to vector<4x256xf32>
    %133 = arith.select %18, %131, %132 : vector<4x256xi1>, vector<4x256xf32>
    %c3_100 = arith.constant 3 : index
    %c0_101 = arith.constant 0 : index
    %c0_102 = arith.constant 0 : index
    %134 = vector.load %arg2[%c3_100, %c0_101, %c0_102] : memref<9x8x4xf32, #tpu.memory_space<vmem>>, vector<1x8x4xf32>
    %135 = vector.shape_cast %134 : vector<1x8x4xf32> to vector<8x4xf32>
    %cst_103 = arith.constant dense<0.000000e+00> : vector<8x256xf32>
    %136 = tpu.matmul %135, %133, %cst_103 {dimension_numbers = #tpu.dot_dimension_numbers<[1], [0], [0], [1], [0, 0, 1, 1], [], []>} : vector<8x4xf32>, vector<4x256xf32>, vector<8x256xf32> -> vector<8x256xf32>
    %137 = arith.addf %129, %136 : vector<8x256xf32>
    %c1_104 = arith.constant 1 : index
    %c0_105 = arith.constant 0 : index
    %c17_106 = arith.constant 17 : index
    %138 = vector.load %arg1[%c1_104, %c0_105, %c17_106] : memref<2x4x290xf32, #tpu.memory_space<vmem>>, vector<1x4x256xf32>
    %139 = vector.shape_cast %138 : vector<1x4x256xf32> to vector<4x256xf32>
    %c4_107 = arith.constant 4 : index
    %c0_108 = arith.constant 0 : index
    %c0_109 = arith.constant 0 : index
    %140 = vector.load %arg2[%c4_107, %c0_108, %c0_109] : memref<9x8x4xf32, #tpu.memory_space<vmem>>, vector<1x8x4xf32>
    %141 = vector.shape_cast %140 : vector<1x8x4xf32> to vector<8x4xf32>
    %cst_110 = arith.constant dense<0.000000e+00> : vector<8x256xf32>
    %142 = tpu.matmul %141, %139, %cst_110 {dimension_numbers = #tpu.dot_dimension_numbers<[1], [0], [0], [1], [0, 0, 1, 1], [], []>} : vector<8x4xf32>, vector<4x256xf32>, vector<8x256xf32> -> vector<8x256xf32>
    %143 = arith.addf %137, %142 : vector<8x256xf32>
    %c1_111 = arith.constant 1 : index
    %c0_112 = arith.constant 0 : index
    %c18_113 = arith.constant 18 : index
    %144 = vector.load %arg1[%c1_111, %c0_112, %c18_113] : memref<2x4x290xf32, #tpu.memory_space<vmem>>, vector<1x4x256xf32>
    %145 = vector.shape_cast %144 : vector<1x4x256xf32> to vector<4x256xf32>
    %cst_114 = arith.constant 0.000000e+00 : f32
    %146 = vector.broadcast %cst_114 : f32 to vector<4x256xf32>
    %147 = arith.select %20, %145, %146 : vector<4x256xi1>, vector<4x256xf32>
    %c5_115 = arith.constant 5 : index
    %c0_116 = arith.constant 0 : index
    %c0_117 = arith.constant 0 : index
    %148 = vector.load %arg2[%c5_115, %c0_116, %c0_117] : memref<9x8x4xf32, #tpu.memory_space<vmem>>, vector<1x8x4xf32>
    %149 = vector.shape_cast %148 : vector<1x8x4xf32> to vector<8x4xf32>
    %cst_118 = arith.constant dense<0.000000e+00> : vector<8x256xf32>
    %150 = tpu.matmul %149, %147, %cst_118 {dimension_numbers = #tpu.dot_dimension_numbers<[1], [0], [0], [1], [0, 0, 1, 1], [], []>} : vector<8x4xf32>, vector<4x256xf32>, vector<8x256xf32> -> vector<8x256xf32>
    %151 = arith.addf %143, %150 : vector<8x256xf32>
    %c1_119 = arith.constant 1 : index
    %c0_120 = arith.constant 0 : index
    %c32_121 = arith.constant 32 : index
    %152 = vector.load %arg1[%c1_119, %c0_120, %c32_121] : memref<2x4x290xf32, #tpu.memory_space<vmem>>, vector<1x4x256xf32>
    %153 = vector.shape_cast %152 : vector<1x4x256xf32> to vector<4x256xf32>
    %cst_122 = arith.constant 0.000000e+00 : f32
    %154 = vector.broadcast %cst_122 : f32 to vector<4x256xf32>
    %155 = arith.select %18, %153, %154 : vector<4x256xi1>, vector<4x256xf32>
    %c6_123 = arith.constant 6 : index
    %c0_124 = arith.constant 0 : index
    %c0_125 = arith.constant 0 : index
    %156 = vector.load %arg2[%c6_123, %c0_124, %c0_125] : memref<9x8x4xf32, #tpu.memory_space<vmem>>, vector<1x8x4xf32>
    %157 = vector.shape_cast %156 : vector<1x8x4xf32> to vector<8x4xf32>
    %cst_126 = arith.constant dense<0.000000e+00> : vector<8x256xf32>
    %158 = tpu.matmul %157, %155, %cst_126 {dimension_numbers = #tpu.dot_dimension_numbers<[1], [0], [0], [1], [0, 0, 1, 1], [], []>} : vector<8x4xf32>, vector<4x256xf32>, vector<8x256xf32> -> vector<8x256xf32>
    %159 = arith.addf %151, %158 : vector<8x256xf32>
    %c1_127 = arith.constant 1 : index
    %c0_128 = arith.constant 0 : index
    %c33_129 = arith.constant 33 : index
    %160 = vector.load %arg1[%c1_127, %c0_128, %c33_129] : memref<2x4x290xf32, #tpu.memory_space<vmem>>, vector<1x4x256xf32>
    %161 = vector.shape_cast %160 : vector<1x4x256xf32> to vector<4x256xf32>
    %c7_130 = arith.constant 7 : index
    %c0_131 = arith.constant 0 : index
    %c0_132 = arith.constant 0 : index
    %162 = vector.load %arg2[%c7_130, %c0_131, %c0_132] : memref<9x8x4xf32, #tpu.memory_space<vmem>>, vector<1x8x4xf32>
    %163 = vector.shape_cast %162 : vector<1x8x4xf32> to vector<8x4xf32>
    %cst_133 = arith.constant dense<0.000000e+00> : vector<8x256xf32>
    %164 = tpu.matmul %163, %161, %cst_133 {dimension_numbers = #tpu.dot_dimension_numbers<[1], [0], [0], [1], [0, 0, 1, 1], [], []>} : vector<8x4xf32>, vector<4x256xf32>, vector<8x256xf32> -> vector<8x256xf32>
    %165 = arith.addf %159, %164 : vector<8x256xf32>
    %c1_134 = arith.constant 1 : index
    %c0_135 = arith.constant 0 : index
    %c34_136 = arith.constant 34 : index
    %166 = vector.load %arg1[%c1_134, %c0_135, %c34_136] : memref<2x4x290xf32, #tpu.memory_space<vmem>>, vector<1x4x256xf32>
    %167 = vector.shape_cast %166 : vector<1x4x256xf32> to vector<4x256xf32>
    %cst_137 = arith.constant 0.000000e+00 : f32
    %168 = vector.broadcast %cst_137 : f32 to vector<4x256xf32>
    %169 = arith.select %20, %167, %168 : vector<4x256xi1>, vector<4x256xf32>
    %c8_138 = arith.constant 8 : index
    %c0_139 = arith.constant 0 : index
    %c0_140 = arith.constant 0 : index
    %170 = vector.load %arg2[%c8_138, %c0_139, %c0_140] : memref<9x8x4xf32, #tpu.memory_space<vmem>>, vector<1x8x4xf32>
    %171 = vector.shape_cast %170 : vector<1x8x4xf32> to vector<8x4xf32>
    %cst_141 = arith.constant dense<0.000000e+00> : vector<8x256xf32>
    %172 = tpu.matmul %171, %169, %cst_141 {dimension_numbers = #tpu.dot_dimension_numbers<[1], [0], [0], [1], [0, 0, 1, 1], [], []>} : vector<8x4xf32>, vector<4x256xf32>, vector<8x256xf32> -> vector<8x256xf32>
    %173 = arith.addf %165, %172 : vector<8x256xf32>
    %174 = vector.broadcast %22 : vector<8x1xf32> to vector<8x256xf32>
    %175 = arith.addf %173, %174 : vector<8x256xf32>
    %cst_142 = arith.constant 0.000000e+00 : f32
    %176 = vector.broadcast %cst_142 : f32 to vector<8x256xf32>
    %177 = arith.maximumf %175, %176 : vector<8x256xf32>
    %cst_143 = arith.constant dense<0.000000e+00> : vector<8xf32>
    %178 = vector.multi_reduction <add>, %177, %cst_143 [1] : vector<8x256xf32> to vector<8xf32>
    %179 = vector.shape_cast %178 : vector<8xf32> to vector<8x1xf32>
    %180 = arith.addf %102, %179 : vector<8x1xf32>
    %181 = arith.mulf %177, %177 : vector<8x256xf32>
    %cst_144 = arith.constant dense<0.000000e+00> : vector<8xf32>
    %182 = vector.multi_reduction <add>, %181, %cst_144 [1] : vector<8x256xf32> to vector<8xf32>
    %183 = vector.shape_cast %182 : vector<8xf32> to vector<8x1xf32>
    %184 = arith.addf %106, %183 : vector<8x1xf32>
    %cst_145 = arith.constant 0.001953125 : f32
    %185 = vector.broadcast %cst_145 : f32 to vector<8x1xf32>
    %186 = arith.mulf %180, %185 : vector<8x1xf32>
    %cst_146 = arith.constant 0.001953125 : f32
    %187 = vector.broadcast %cst_146 : f32 to vector<8x1xf32>
    %188 = arith.mulf %184, %187 : vector<8x1xf32>
    %189 = arith.mulf %186, %186 : vector<8x1xf32>
    %190 = arith.subf %188, %189 : vector<8x1xf32>
    %cst_147 = arith.constant 0.000000e+00 : f32
    %191 = vector.broadcast %cst_147 : f32 to vector<8x1xf32>
    %192 = arith.maximumf %190, %191 : vector<8x1xf32>
    %cst_148 = arith.constant 9.99999974E-6 : f32
    %193 = vector.broadcast %cst_148 : f32 to vector<8x1xf32>
    %194 = arith.addf %192, %193 : vector<8x1xf32>
    %195 = math.rsqrt %194 : vector<8x1xf32>
    %196 = arith.mulf %24, %195 : vector<8x1xf32>
    %197 = arith.mulf %186, %196 : vector<8x1xf32>
    %198 = arith.subf %26, %197 : vector<8x1xf32>
    %199 = vector.broadcast %196 : vector<8x1xf32> to vector<8x256xf32>
    %200 = arith.mulf %99, %199 : vector<8x256xf32>
    %201 = vector.broadcast %198 : vector<8x1xf32> to vector<8x256xf32>
    %202 = arith.addf %200, %201 : vector<8x256xf32>
    %c0_149 = arith.constant 0 : index
    %c0_150 = arith.constant 0 : index
    %c0_151 = arith.constant 0 : index
    %203 = vector.load %arg4[%c0_149, %c0_150, %c0_151] : memref<2x8x256xf32, #tpu.memory_space<vmem>>, vector<1x8x256xf32>
    %204 = vector.shape_cast %203 : vector<1x8x256xf32> to vector<8x256xf32>
    %205 = vector.shape_cast %202 : vector<8x256xf32> to vector<1x8x256xf32>
    tpu.vector_store %arg4[%c0_149, %c0_150, %c0_151], %205 {strides = array<i32>} : memref<2x8x256xf32, #tpu.memory_space<vmem>>, vector<1x8x256xf32>,
    %206 = vector.broadcast %196 : vector<8x1xf32> to vector<8x256xf32>
    %207 = arith.mulf %177, %206 : vector<8x256xf32>
    %208 = vector.broadcast %198 : vector<8x1xf32> to vector<8x256xf32>
    %209 = arith.addf %207, %208 : vector<8x256xf32>
    %c1_152 = arith.constant 1 : index
    %c0_153 = arith.constant 0 : index
    %c0_154 = arith.constant 0 : index
    %210 = vector.load %arg4[%c1_152, %c0_153, %c0_154] : memref<2x8x256xf32, #tpu.memory_space<vmem>>, vector<1x8x256xf32>
    %211 = vector.shape_cast %210 : vector<1x8x256xf32> to vector<8x256xf32>
    %212 = vector.shape_cast %209 : vector<8x256xf32> to vector<1x8x256xf32>
    tpu.vector_store %arg4[%c1_152, %c0_153, %c0_154], %212 {strides = array<i32>} : memref<2x8x256xf32, #tpu.memory_space<vmem>>, vector<1x8x256xf32>,
    return
  }
  func.func @transform_0(%arg0: i32) -> (i32, i32, i32) {
    %c0_i32 = arith.constant 0 : i32
    %c0_i32_0 = arith.constant 0 : i32
    %c0_i32_1 = arith.constant 0 : i32
    %c0_i32_2 = arith.constant 0 : i32
    return %c0_i32, %c0_i32_0, %c0_i32_1 : i32, i32, i32
  }
  func.func @transform_1(%arg0: i32) -> (i32, i32, i32) {
    %c0_i32 = arith.constant 0 : i32
    %c0_i32_0 = arith.constant 0 : i32
    %c0_i32_1 = arith.constant 0 : i32
    %c0_i32_2 = arith.constant 0 : i32
    return %c0_i32, %c0_i32_0, %c0_i32_1 : i32, i32, i32
  }
  func.func @transform_2(%arg0: i32) -> (i32, i32, i32) {
    %c0_i32 = arith.constant 0 : i32
    %c0_i32_0 = arith.constant 0 : i32
    %c0_i32_1 = arith.constant 0 : i32
    %c0_i32_2 = arith.constant 0 : i32
    return %c0_i32, %c0_i32_0, %c0_i32_1 : i32, i32, i32
  }
  func.func @transform_3(%arg0: i32) -> (i32, i32, i32) {
    %c0_i32 = arith.constant 0 : i32
    %c0_i32_0 = arith.constant 0 : i32
    %c0_i32_1 = arith.constant 0 : i32
    %c0_i32_2 = arith.constant 0 : i32
    return %c0_i32, %c0_i32_0, %c0_i32_1 : i32, i32, i32
  }
}

</mosaic_0001>

<bundles_post_ra>
// kernel: tpu_custom_call.1
= control target key start
LH: loop header
LB: loop body
LE: loop exit
PB: predicated region body
PF: predicated region fallthrough
CT: control target
= control target key end

     0   :  { %s1999_s16 = smov 127   ;;  %s2350_s0 = inlined_call_operand.vmem [shape: f32[2,4,290], index: 0, kind: input, shape index: {}]   ;;  %s2351_s1 = inlined_call_operand.vmem [shape: f32[9,8,4], index: 1, kind: input, shape index: {}]   ;;  %s2352_s2 = inlined_call_operand.vmem [shape: f32[3,8,1], index: 2, kind: input, shape index: {}]   ;;  %s2353_s3 = inlined_call_operand.hbm [shape: f32[2,8,256], index: 3, kind: output, shape index: {}]  }
   0x1   :  { %v2035_v0 = vld [vmem:[%s2350_s0 + $0xc] sm:$0xff]  ;;  %v2040_v1 = vld [vmem:[%s2350_s0] sm:$0xff]  ;;  %v1882_v4 = vld [vmem:[%s2350_s0 + $0x14] sm:$0xf] }
   0x2   :  { %v2044_v2 = vcombine.high %v2035_v0, %v2035_v0  ;;  %v2048_v3 = vcombine.high %v2040_v1, %v2040_v1  ;;  %v58_v5 = vld [vmem:[%s2350_s0 + $0x8] sm:$0xf] }
   0x4   :  { %963 = vrot.lane.b32.xlu1 %v2044_v2, %s1999_s16  ;;  %64 = vrot.lane.b32.xlu0 %v2048_v3, %s1999_s16 }
   0x8   :  { %965 = vrot.lane.b32.xlu1 %v1882_v4, %s1999_s16  ;;  %66 = vrot.lane.b32.xlu0 %v58_v5, %s1999_s16 }
   0x9   :  { %8 = vsyncpa [#allocation3], 0  ;;  %v2000_v6 = vmov 0.0   ;;  %v232_v7 = vld [vmem:[%s2350_s0 + $0x8] sm:$0xf]  ;;  %s2001_s23 = smov 126   ;;  %v15_v23 = vlaneseq }
   0xa   :  { %144 = vmatprep.mubr.f32.mxu0 %v2000_v6  ;;  %1037 = vmatprep.mubr.f32.mxu1 %v2000_v6  ;;  %v1890_v8 = vld [vmem:[%s2350_s0 + $0x14] sm:$0xf]  ;;  %v334_v9 = vld [vmem:[%s2350_s0 + $0x8] sm:$0xf]  ;;  %s2002_s28 = smov 112   ;;  %s2003_s6 = smov 111  }
   0xb   :  { %v1895_v10 = vld [vmem:[%s2350_s0 + $0x14] sm:$0xf]  ;;  %v436_v11 = vld [vmem:[%s2350_s0 + $0x8] sm:$0xf]  ;;  %s2004_s11 = smov 110   ;;  %s2006_s21 = smov 95  }
   0xc   :  { %961 = vrot.lane.b32.xlu1 %v2035_v0, %s1999_s16  ;;  %62 = vrot.lane.b32.xlu0 %v2040_v1, %s1999_s16  ;;  %v1900_v12 = vld [vmem:[%s2350_s0 + $0x14] sm:$0xf]  ;;  %v532_v13 = vld [vmem:[%s2350_s0 + $0x8] sm:$0xf]  ;;  %s2005_s16 = smov 96   ;;  %v2007_v20 = vmov 0  }
   0xd   :  { %v1905_v14 = vld [vmem:[%s2350_s0 + $0x14] sm:$0xf]  ;;  %v634_v15 = vld [vmem:[%s2350_s0 + $0x8] sm:$0xf]  ;;  %1969 = vset.pattern.permute.xlu0 %v2007_v20  ;;  %1970 = vset.pattern.permute.xlu1 %v2007_v20  ;;  %s2008_s26 = smov 94   ;;  %v46_v22 = vld [vmem:[%s2352_s2] sm:$0xff] }
   0xe   :  { %v1910_v16 = vld [vmem:[%s2350_s0 + $0x14] sm:$0xf]  ;;  %v736_v17 = vld [vmem:[%s2350_s0 + $0x8] sm:$0xf]  ;;  %v16_v24 = vand.u32 127, %v15_v23  ;;  %vm68_vm0 = vcmask 1039360  }
   0xf   :  { %v1915_v18 = vld [vmem:[%s2350_s0 + $0x14] sm:$0xf]  ;;  %v832_v19 = vld [vmem:[%s2350_s0 + $0x8] sm:$0xf]  ;;  %vm75_vm1 = vcmask 1043456   ;;  %vm71_vm4 = vcmask 31744  }
  0x10   :  { %240 = vrot.lane.b32.xlu1 %v232_v7, %s2001_s23  ;;  %238 = vrot.lane.b32.xlu0 %v2048_v3, %s2001_s23  ;;  %v1920_v21 = vld [vmem:[%s2350_s0 + $0x14] sm:$0xf]  ;;  %v17_v25 = vadd.s32 128, %v16_v24  ;;  %v22_v29 = vand.u32 15, %v16_v24  ;;  %v1846_v39 = vld [vmem:[%s2351_s1 + $0x8] sm:$0xff]  ;;  %vm242_vm5 = vcmask 1031168  }
  0x11   :  { %v57_v52 = vld [vmem:[%s2351_s1] sm:$0xff]  ;;  %vm344_vm8 = vcmask 916480   ;;  %vm448_vm9 = vcmask 908288   ;;  %vm542_vm10 = vcmask 900096   ;;  %vm644_vm11 = vcmask 785408   ;;  %s2009_s24 = smov [#allocation2]  }
  0x12   :  { %v29_v28 = vand.u32 15, %v17_v25  ;;  %vm2143_vm3 = vcmp.ne.s32.totalorder %v22_v29, 0  ;;  %vm2189_vm7 = vcmp.ne.s32.totalorder %v22_v29, 15  ;;  %v1861_v23 = vld [vmem:[%s2351_s1 + $0x20] sm:$0xff]  ;;  %vm748_vm12 = vcmask 777216   ;;  %s1833_s25 = sshll.u32 %s2009_s24, 4  ;;  %s1834_s25 = int_to_ptr.vmem [resolvable:$true] %s1833_s25 }
  0x13   :  { %v55_v42 = vsel %vm2143_vm3, %v2040_v1, 0.0  ;;  %v957_v45 = vsel %vm2143_vm3, %v2035_v0, 0.0  ;;  %vm842_vm13 = vcmask 769024   ;;  %p1980_p1 = scmp.lt.s32.totalorder %s1834_s25, %s1834_s25 }
  0x14   :  { %1130 = vrot.lane.b32.xlu1 %v1890_v8, %s2001_s23  ;;  %1128 = vrot.lane.b32.xlu0 %v2044_v2, %s2001_s23  ;;  %vm2137_vm2 = vcmp.ne.s32.totalorder %v29_v28, 0  ;;  %vm2163_vm6 = vcmp.ne.s32.totalorder %v29_v28, 15 }
  0x15   :  { %v56_v38 = vsel %vm2137_vm2, %v2048_v3, 0.0  ;;  %v958_v43 = vsel %vm2137_vm2, %v2044_v2, 0.0 }
  0x18   :  { %1126 = vrot.lane.b32.xlu1 %v2035_v0, %s2001_s23  ;;  %236 = vrot.lane.b32.xlu0 %v2040_v1, %s2001_s23 }
  0x1c   :  { %342 = vrot.lane.b32.xlu1 %v334_v9, %s2002_s28  ;;  %340 = vrot.lane.b32.xlu0 %v2048_v3, %s2002_s28 }
  0x20   :  { %1226 = vrot.lane.b32.xlu1 %v1895_v10, %s2002_s28  ;;  %1224 = vrot.lane.b32.xlu0 %v2044_v2, %s2002_s28 }
  0x24   :  { %1222 = vrot.lane.b32.xlu1 %v2035_v0, %s2002_s28  ;;  %338 = vrot.lane.b32.xlu0 %v2040_v1, %s2002_s28 }
  0x28   :  { %446 = vrot.lane.b32.xlu1 %v436_v11, %s2003_s6  ;;  %444 = vrot.lane.b32.xlu0 %v2048_v3, %s2003_s6 }
  0x2c   :  { %1322 = vrot.lane.b32.xlu1 %v1900_v12, %s2003_s6  ;;  %1320 = vrot.lane.b32.xlu0 %v2044_v2, %s2003_s6  ;;  %v1857_v12 = vld [vmem:[%s2351_s1 + $0x18] sm:$0xff] }
  0x30   :  { %1318 = vrot.lane.b32.xlu1 %v2035_v0, %s2003_s6  ;;  %442 = vrot.lane.b32.xlu0 %v2040_v1, %s2003_s6 }
  0x34   :  { %540 = vrot.lane.b32.xlu1 %v532_v13, %s2004_s11  ;;  %538 = vrot.lane.b32.xlu0 %v2048_v3, %s2004_s11 }
  0x38   :  { %1412 = vrot.lane.b32.xlu1 %v1905_v14, %s2004_s11  ;;  %1410 = vrot.lane.b32.xlu0 %v2044_v2, %s2004_s11 }
  0x3c   :  { %1408 = vrot.lane.b32.xlu1 %v2035_v0, %s2004_s11  ;;  %536 = vrot.lane.b32.xlu0 %v2040_v1, %s2004_s11 }
  0x40   :  { %642 = vrot.lane.b32.xlu1 %v634_v15, %s2005_s16  ;;  %640 = vrot.lane.b32.xlu0 %v2048_v3, %s2005_s16 }
  0x44   :  { %1508 = vrot.lane.b32.xlu1 %v1910_v16, %s2005_s16  ;;  %1506 = vrot.lane.b32.xlu0 %v2044_v2, %s2005_s16 }
  0x48   :  { %1504 = vrot.lane.b32.xlu1 %v2035_v0, %s2005_s16  ;;  %638 = vrot.lane.b32.xlu0 %v2040_v1, %s2005_s16 }
  0x4c   :  { %746 = vrot.lane.b32.xlu1 %v736_v17, %s2006_s21  ;;  %744 = vrot.lane.b32.xlu0 %v2048_v3, %s2006_s21 }
  0x50   :  { %1604 = vrot.lane.b32.xlu1 %v1915_v18, %s2006_s21  ;;  %1602 = vrot.lane.b32.xlu0 %v2044_v2, %s2006_s21 }
  0x54   :  { %1600 = vrot.lane.b32.xlu1 %v2035_v0, %s2006_s21  ;;  %742 = vrot.lane.b32.xlu0 %v2040_v1, %s2006_s21 }
  0x58   :  { %840 = vrot.lane.b32.xlu1 %v832_v19, %s2008_s26  ;;  %838 = vrot.lane.b32.xlu0 %v2048_v3, %s2008_s26 }
  0x5c   :  { %1694 = vrot.lane.b32.xlu1 %v1920_v21, %s2008_s26  ;;  %1692 = vrot.lane.b32.xlu0 %v2044_v2, %s2008_s26 }
  0x60   :  { %1690 = vrot.lane.b32.xlu1 %v2035_v0, %s2008_s26  ;;  %836 = vrot.lane.b32.xlu0 %v2040_v1, %s2008_s26  ;;  %v1853_v0 = vld [vmem:[%s2351_s1 + $0x10] sm:$0xff] }
  0x64   :  { %935 = vperm.xlu0 %1969, %v46_v22  }
  0x76   :  { %v964_v26 = vpop.permute.xlu1 %963  ;;  %v65_v27 = vpop.permute.xlu0 %64 }
  0x7a   :  { %v966_v30 = vpop.permute.xlu1 %965  ;;  %v67_v31 = vpop.permute.xlu0 %66 }
  0x7b   :  { %v70_v32 = vsel %vm68_vm0, %v65_v27, %v67_v31  ;;  %v968_v33 = vsel %vm68_vm0, %v964_v26, %v966_v30 }
  0x7c   :  { %1847 = vmatprep.subr.msk.mxu0 %vm75_vm1, %v70_v32  ;;  %1883 = vmatprep.subr.msk.mxu1 %vm75_vm1, %v968_v33 }
  0x7e   :  { %v962_v36 = vpop.permute.xlu1 %961  ;;  %v63_v37 = vpop.permute.xlu0 %62 }
  0x7f   :  { %v69_v40 = vsel %vm68_vm0, %v63_v37, %v65_v27  ;;  %v967_v41 = vsel %vm68_vm0, %v962_v36, %v964_v26 }
  0x80   :  { %1848 = vmatpush1.msk.msra.mxu0 %vm75_vm1, %v69_v40  ;;  %1884 = vmatpush1.msk.msra.mxu1 %vm75_vm1, %v967_v41  ;;  %v1865_v40 = vld [vmem:[%s2351_s1 + $0x28] sm:$0xff] }
  0x81   :  { %1850 = vmatprep.subr.msk.mxu0 %vm75_vm1, %v56_v38  ;;  %1849 = vmatmul.mubr.msk.f32.vlgmr.msra.gmra.mrb[0].mxu0 %vm71_vm4, %v1846_v39 }
  0x82   :  { %v241_v46 = vpop.permute.xlu1 %240  ;;  %v239_v47 = vpop.permute.xlu0 %238  ;;  %1851 = vmatpush1.msk.msra.mxu0 %vm75_vm1, %v55_v42  ;;  %1885 = vmatmul.mubr.msk.f32.vlgmr.msra.gmra.mrb[0].mxu1 %vm71_vm4, %v1846_v39 }
  0x83   :  { %v244_v48 = vsel %vm242_vm5, %v239_v47, %v241_v46  ;;  %1886 = vmatprep.subr.msk.mxu1 %vm75_vm1, %v958_v43  ;;  %224 = vmatprep.mubr.f32.mxu0 %v2000_v6 }
  0x84   :  { %v248_v49 = vsel %vm2163_vm6, %v244_v48, 0.0  ;;  %1887 = vmatpush1.msk.msra.mxu1 %vm75_vm1, %v957_v45  ;;  %1114 = vmatprep.mubr.f32.mxu1 %v2000_v6 }
  0x85   :  { %1854 = vmatprep.subr.msk.mxu0 %vm75_vm1, %v248_v49 }
  0x86   :  { %v1131_v50 = vpop.permute.xlu1 %1130  ;;  %v1129_v51 = vpop.permute.xlu0 %1128 }
  0x87   :  { %v1133_v53 = vsel %vm242_vm5, %v1129_v51, %v1131_v50 }
  0x88   :  { %v1137_v54 = vsel %vm2163_vm6, %v1133_v53, 0.0 }
  0x89   :  { %1891 = vmatprep.subr.msk.mxu1 %vm75_vm1, %v1137_v54  ;;  %1852 = vmatmul.mubr.msk.f32.vlgmr.msra.gmra.mrb[0].mxu0 %vm71_vm4, %v57_v52 }
  0x8a   :  { %v1127_v56 = vpop.permute.xlu1 %1126  ;;  %v237_v57 = vpop.permute.xlu0 %236  ;;  %1888 = vmatmul.mubr.msk.f32.vlgmr.msra.gmra.mrb[0].mxu1 %vm71_vm4, %v57_v52  ;;  %324 = vmatprep.mubr.f32.mxu0 %v2000_v6 }
  0x8b   :  { %v1132_v58 = vsel %vm242_vm5, %v1127_v56, %v1129_v51  ;;  %v243_v59 = vsel %vm242_vm5, %v237_v57, %v239_v47  ;;  %1208 = vmatprep.mubr.f32.mxu1 %v2000_v6  ;;  %v1869_v57 = vld [vmem:[%s2351_s1 + $0x30] sm:$0xff] }
  0x8c   :  { %v1136_v60 = vsel %vm2189_vm7, %v1132_v58, 0.0  ;;  %v247_v61 = vsel %vm2189_vm7, %v243_v59, 0.0 }
  0x8d   :  { %1855 = vmatpush1.msk.msra.mxu0 %vm75_vm1, %v247_v61  ;;  %1892 = vmatpush1.msk.msra.mxu1 %vm75_vm1, %v1136_v60 }
  0x8e   :  { %v343_v62 = vpop.permute.xlu1 %342  ;;  %v341_v63 = vpop.permute.xlu0 %340 }
  0x8f   :  { %v346_v1 = vsel %vm344_vm8, %v341_v63, %v343_v62 }
  0x90   :  { %v350_v2 = vsel %vm2137_vm2, %v346_v1, 0.0 }
  0x91   :  { %1858 = vmatprep.subr.msk.mxu0 %vm75_vm1, %v350_v2  ;;  %1856 = vmatmul.mubr.msk.f32.vlgmr.msra.gmra.mrb[0].mxu0 %vm71_vm4, %v1853_v0  ;;  %v1873_v2 = vld [vmem:[%s2351_s1 + $0x38] sm:$0xff] }
  0x92   :  { %v1227_v3 = vpop.permute.xlu1 %1226  ;;  %v1225_v4 = vpop.permute.xlu0 %1224  ;;  %1893 = vmatmul.mubr.msk.f32.vlgmr.msra.gmra.mrb[0].mxu1 %vm71_vm4, %v1853_v0  ;;  %426 = vmatprep.mubr.f32.mxu0 %v2000_v6 }
  0x93   :  { %v1229_v5 = vsel %vm344_vm8, %v1225_v4, %v1227_v3  ;;  %1304 = vmatprep.mubr.f32.mxu1 %v2000_v6 }
  0x94   :  { %v1233_v7 = vsel %vm2137_vm2, %v1229_v5, 0.0 }
  0x95   :  { %1896 = vmatprep.subr.msk.mxu1 %vm75_vm1, %v1233_v7 }
  0x96   :  { %v1223_v8 = vpop.permute.xlu1 %1222  ;;  %v339_v9 = vpop.permute.xlu0 %338 }
  0x97   :  { %v1228_v10 = vsel %vm344_vm8, %v1223_v8, %v1225_v4  ;;  %v345_v11 = vsel %vm344_vm8, %v339_v9, %v341_v63 }
  0x98   :  { %v1232_v13 = vsel %vm2143_vm3, %v1228_v10, 0.0  ;;  %v349_v14 = vsel %vm2143_vm3, %v345_v11, 0.0 }
  0x99   :  { %1859 = vmatpush1.msk.msra.mxu0 %vm75_vm1, %v349_v14  ;;  %1897 = vmatpush1.msk.msra.mxu1 %vm75_vm1, %v1232_v13 }
  0x9a   :  { %v447_v15 = vpop.permute.xlu1 %446  ;;  %v445_v16 = vpop.permute.xlu0 %444  ;;  %1860 = vmatmul.mubr.msk.f32.vlgmr.msra.gmra.mrb[0].mxu0 %vm71_vm4, %v1857_v12  ;;  %1898 = vmatmul.mubr.msk.f32.vlgmr.msra.gmra.mrb[0].mxu1 %vm71_vm4, %v1857_v12 }
  0x9b   :  { %v450_v17 = vsel %vm448_vm9, %v445_v16, %v447_v15  ;;  %522 = vmatprep.mubr.f32.mxu0 %v2000_v6  ;;  %1394 = vmatprep.mubr.f32.mxu1 %v2000_v6 }
  0x9c   :  { %1862 = vmatprep.subr.msk.mxu0 %vm75_vm1, %v450_v17  ;;  %v1877_v17 = vld [vmem:[%s2351_s1 + $0x40] sm:$0xff] }
  0x9e   :  { %v1323_v18 = vpop.permute.xlu1 %1322  ;;  %v1321_v19 = vpop.permute.xlu0 %1320 }
  0x9f   :  { %v1325_v20 = vsel %vm448_vm9, %v1321_v19, %v1323_v18 }
  0xa0   :  { %1901 = vmatprep.subr.msk.mxu1 %vm75_vm1, %v1325_v20 }
  0xa2   :  { %v1319_v21 = vpop.permute.xlu1 %1318  ;;  %v443_v22 = vpop.permute.xlu0 %442 }
  0xa3   :  { %v1324_v24 = vsel %vm448_vm9, %v1319_v21, %v1321_v19  ;;  %v449_v25 = vsel %vm448_vm9, %v443_v22, %v445_v16 }
  0xa4   :  { %1863 = vmatpush1.msk.msra.mxu0 %vm75_vm1, %v449_v25  ;;  %1902 = vmatpush1.msk.msra.mxu1 %vm75_vm1, %v1324_v24 }
  0xa5   :  { %1864 = vmatmul.mubr.msk.f32.vlgmr.msra.gmra.mrb[0].mxu0 %vm71_vm4, %v1861_v23  ;;  %1903 = vmatmul.mubr.msk.f32.vlgmr.msra.gmra.mrb[0].mxu1 %vm71_vm4, %v1861_v23 }
  0xa6   :  { %v541_v26 = vpop.permute.xlu1 %540  ;;  %v539_v27 = vpop.permute.xlu0 %538  ;;  %624 = vmatprep.mubr.f32.mxu0 %v2000_v6  ;;  %1490 = vmatprep.mubr.f32.mxu1 %v2000_v6 }
  0xa7   :  { %v544_v28 = vsel %vm542_vm10, %v539_v27, %v541_v26 }
  0xa8   :  { %v548_v29 = vsel %vm2163_vm6, %v544_v28, 0.0 }
  0xa9   :  { %1866 = vmatprep.subr.msk.mxu0 %vm75_vm1, %v548_v29 }
  0xaa   :  { %v1413_v30 = vpop.permute.xlu1 %1412  ;;  %v1411_v31 = vpop.permute.xlu0 %1410 }
  0xab   :  { %v1415_v32 = vsel %vm542_vm10, %v1411_v31, %v1413_v30 }
  0xac   :  { %v1419_v33 = vsel %vm2163_vm6, %v1415_v32, 0.0 }
  0xad   :  { %1906 = vmatprep.subr.msk.mxu1 %vm75_vm1, %v1419_v33 }
  0xae   :  { %v1409_v36 = vpop.permute.xlu1 %1408  ;;  %v537_v37 = vpop.permute.xlu0 %536 }
  0xaf   :  { %v1414_v38 = vsel %vm542_vm10, %v1409_v36, %v1411_v31  ;;  %v543_v39 = vsel %vm542_vm10, %v537_v37, %v539_v27 }
  0xb0   :  { %v1418_v41 = vsel %vm2189_vm7, %v1414_v38, 0.0  ;;  %v547_v42 = vsel %vm2189_vm7, %v543_v39, 0.0 }
  0xb1   :  { %1867 = vmatpush1.msk.msra.mxu0 %vm75_vm1, %v547_v42  ;;  %1907 = vmatpush1.msk.msra.mxu1 %vm75_vm1, %v1418_v41 }
  0xb2   :  { %v643_v43 = vpop.permute.xlu1 %642  ;;  %v641_v45 = vpop.permute.xlu0 %640  ;;  %1868 = vmatmul.mubr.msk.f32.vlgmr.msra.gmra.mrb[0].mxu0 %vm71_vm4, %v1865_v40  ;;  %1908 = vmatmul.mubr.msk.f32.vlgmr.msra.gmra.mrb[0].mxu1 %vm71_vm4, %v1865_v40 }
  0xb3   :  { %v646_v46 = vsel %vm644_vm11, %v641_v45, %v643_v43  ;;  %726 = vmatprep.mubr.f32.mxu0 %v2000_v6  ;;  %1586 = vmatprep.mubr.f32.mxu1 %v2000_v6 }
  0xb4   :  { %v650_v47 = vsel %vm2137_vm2, %v646_v46, 0.0 }
  0xb5   :  { %1870 = vmatprep.subr.msk.mxu0 %vm75_vm1, %v650_v47 }
  0xb6   :  { %v1509_v48 = vpop.permute.xlu1 %1508  ;;  %v1507_v49 = vpop.permute.xlu0 %1506 }
  0xb7   :  { %v1511_v50 = vsel %vm644_vm11, %v1507_v49, %v1509_v48 }
  0xb8   :  { %v1515_v51 = vsel %vm2137_vm2, %v1511_v50, 0.0 }
  0xb9   :  { %1911 = vmatprep.subr.msk.mxu1 %vm75_vm1, %v1515_v51 }
  0xba   :  { %v1505_v52 = vpop.permute.xlu1 %1504  ;;  %v639_v53 = vpop.permute.xlu0 %638 }
  0xbb   :  { %v1510_v54 = vsel %vm644_vm11, %v1505_v52, %v1507_v49  ;;  %v645_v56 = vsel %vm644_vm11, %v639_v53, %v641_v45 }
  0xbc   :  { %v1514_v58 = vsel %vm2143_vm3, %v1510_v54, 0.0  ;;  %v649_v59 = vsel %vm2143_vm3, %v645_v56, 0.0  ;;  %v1844_v54 = vld [vmem:[%s2352_s2 + $0x8] sm:$0xff] }
  0xbd   :  { %1871 = vmatpush1.msk.msra.mxu0 %vm75_vm1, %v649_v59  ;;  %1912 = vmatpush1.msk.msra.mxu1 %vm75_vm1, %v1514_v58  ;;  %v1845_v58 = vld [vmem:[%s2352_s2 + $0x10] sm:$0xff]  ;;  %s1975_s2 = scalar_lea.vmem %s1834_s25, 512 }
  0xbe   :  { %v747_v34 = vpop.permute.xlu1 %746  ;;  %v745_v60 = vpop.permute.xlu0 %744  ;;  %1872 = vmatmul.mubr.msk.f32.vlgmr.msra.gmra.mrb[0].mxu0 %vm71_vm4, %v1869_v57  ;;  %1913 = vmatmul.mubr.msk.f32.vlgmr.msra.gmra.mrb[0].mxu1 %vm71_vm4, %v1869_v57  ;;  %p1976_p0 = scmp.ne.s32.totalorder %s1834_s25, %s1975_s2  ;;  %p1981_p2 = scmp.lt.s32.totalorder %s1975_s2, %s1975_s2 }
  0xbf   :  { %v750_v61 = vsel %vm748_vm12, %v745_v60, %v747_v34  ;;  %822 = vmatprep.mubr.f32.mxu0 %v2000_v6  ;;  %1676 = vmatprep.mubr.f32.mxu1 %v2000_v6 }
  0xc0   :  { %1874 = vmatprep.subr.msk.mxu0 %vm75_vm1, %v750_v61  ;;  %p1982_p3 = por %p1981_p2, %p1980_p1 }
  0xc2   :  { %v1605_v35 = vpop.permute.xlu1 %1604  ;;  %v1603_v62 = vpop.permute.xlu0 %1602  ;;  %p1983_p4 = pnand %p1982_p3, %p1976_p0 }
  0xc3   :  { %v1607_v63 = vsel %vm748_vm12, %v1603_v62, %v1605_v35 }
  0xc4   :  { %1916 = vmatprep.subr.msk.mxu1 %vm75_vm1, %v1607_v63 }
  0xc6   :  { %v1601_v0 = vpop.permute.xlu1 %1600  ;;  %v743_v1 = vpop.permute.xlu0 %742 }
  0xc7   :  { %v1606_v3 = vsel %vm748_vm12, %v1601_v0, %v1603_v62  ;;  %v749_v4 = vsel %vm748_vm12, %v743_v1, %v745_v60 }
  0xc8   :  { %1875 = vmatpush1.msk.msra.mxu0 %vm75_vm1, %v749_v4  ;;  %1917 = vmatpush1.msk.msra.mxu1 %vm75_vm1, %v1606_v3 }
  0xc9   :  { %1876 = vmatmul.mubr.msk.f32.vlgmr.msra.gmra.mrb[0].mxu0 %vm71_vm4, %v1873_v2  ;;  %1918 = vmatmul.mubr.msk.f32.vlgmr.msra.gmra.mrb[0].mxu1 %vm71_vm4, %v1873_v2 }
  0xca   :  { %v841_v5 = vpop.permute.xlu1 %840  ;;  %v839_v7 = vpop.permute.xlu0 %838  ;;  %924 = vmatprep.mubr.f32.mxu0 %v2000_v6  ;;  %1772 = vmatprep.mubr.f32.mxu1 %v2000_v6 }
  0xcb   :  { %v844_v8 = vsel %vm842_vm13, %v839_v7, %v841_v5 }
  0xcc   :  { %v848_v9 = vsel %vm2163_vm6, %v844_v8, 0.0 }
  0xcd   :  { %1878 = vmatprep.subr.msk.mxu0 %vm75_vm1, %v848_v9 }
  0xce   :  { %v1695_v10 = vpop.permute.xlu1 %1694  ;;  %v1693_v11 = vpop.permute.xlu0 %1692 }
  0xcf   :  { %v1697_v12 = vsel %vm842_vm13, %v1693_v11, %v1695_v10 }
  0xd0   :  { %v1701_v13 = vsel %vm2163_vm6, %v1697_v12, 0.0 }
  0xd1   :  { %1921 = vmatprep.subr.msk.mxu1 %vm75_vm1, %v1701_v13 }
  0xd2   :  { %v1691_v14 = vpop.permute.xlu1 %1690  ;;  %v837_v15 = vpop.permute.xlu0 %836 }
  0xd3   :  { %v1696_v6 = vsel %vm842_vm13, %v1691_v14, %v1693_v11  ;;  %v843_v16 = vsel %vm842_vm13, %v837_v15, %v839_v7 }
  0xd4   :  { %v1700_v18 = vsel %vm2189_vm7, %v1696_v6, 0.0  ;;  %v847_v19 = vsel %vm2189_vm7, %v843_v16, 0.0 }
  0xd5   :  { %1879 = vmatpush1.msk.msra.mxu0 %vm75_vm1, %v847_v19  ;;  %1922 = vmatpush1.msk.msra.mxu1 %vm75_vm1, %v1700_v18 }
  0xd6   :  { %1880 = vmatmul.mubr.msk.f32.vlgmr.msra.gmra.mrb[0].mxu0 %vm71_vm4, %v1877_v17  ;;  %1923 = vmatmul.mubr.msk.f32.vlgmr.msra.gmra.mrb[0].mxu1 %vm71_vm4, %v1877_v17 }
  0xe3   :  { %v936_v44 = vpop.permute.xlu0 %935 }
 0x1a9   :  { %v926_v20 = vpop.f32.mrb[0].mxu0  ;;  %v1774_v21 = vpop.f32.mrb[0].mxu1 }
 0x1aa   :  { %v938_v22 = vadd.f32 %v936_v44, %v926_v20  ;;  %v1781_v23 = vadd.f32 %v1774_v21, %v936_v44  ;;  %v928_v24 = vpop.f32.mrb[1].mxu0  ;;  %v1776_v25 = vpop.f32.mrb[1].mxu1 }
 0x1ab   :  { %v939_v26 = vadd.f32 %v936_v44, %v928_v24  ;;  %v1782_v27 = vadd.f32 %v1776_v25, %v936_v44 }
 0x1ac   :  { %v940_v28 = vmax.f32 %v938_v22, 0.0  ;;  %v1783_v55 = vmax.f32 %v1781_v23, 0.0 }
 0x1ad   :  { %v941_v29 = vmax.f32 %v939_v26, 0.0  ;;  %v1784_v30 = vmax.f32 %v1782_v27, 0.0 }
 0x1ae   :  { %v1789_v31 = vmul.f32 %v1783_v55, %v1783_v55  ;;  %v946_v32 = vmul.f32 %v940_v28, %v940_v28 }
 0x1af   :  { %v1785_v33 = vadd.f32 %v1784_v30, %v1783_v55  ;;  %v942_v36 = vadd.f32 %v941_v29, %v940_v28  ;;  %v1790_v37 = vmul.f32 %v1784_v30, %v1784_v30  ;;  %v947_v38 = vmul.f32 %v941_v29, %v941_v29 }
 0x1b1   :  { %1786 = vadd.xlane.f32.xlu0 %v1785_v33  ;;  %943 = vadd.xlane.f32.xlu1 %v942_v36  ;;  %v1791_v39 = vadd.f32 %v1790_v37, %v1789_v31  ;;  %v948_v40 = vadd.f32 %v947_v38, %v946_v32 }
 0x1b5   :  { %1792 = vadd.xlane.f32.xlu0 %v1791_v39  ;;  %949 = vadd.xlane.f32.xlu1 %v948_v40 }
 0x23e   :  { %v1787_v41 = vpop.xlane.xlu0 %1786  ;;  %v944_v42 = vpop.xlane.xlu1 %943 }
 0x23f   :  { %v1788_v43 = vadd.f32 %v1787_v41, %v944_v42 }
 0x241   :  { %v1795_v45 = vmul.f32 0.001953125, %v1788_v43 }
 0x242   :  { %v1793_v46 = vpop.xlane.xlu0 %1792  ;;  %v950_v47 = vpop.xlane.xlu1 %949 }
 0x243   :  { %v1794_v48 = vadd.f32 %v1793_v46, %v950_v47  ;;  %v1797_v49 = vmul.f32 %v1795_v45, %v1795_v45 }
 0x245   :  { %v1796_v50 = vmul.f32 0.001953125, %v1794_v48 }
 0x247   :  { %v1798_v51 = vsub.f32 %v1796_v50, %v1797_v49 }
 0x249   :  { %v1799_v52 = vmax.f32 %v1798_v51, 0.0 }
 0x24b   :  { %v1800_v53 = vadd.f32 1e-05, %v1799_v52 }
 0x24d   :  { %1973 = vrsqrt.f32 %v1800_v53 }
 0x257   :  { %v1974_v56 = vpop.eup %1973 }
 0x258   :  { %v1802_v57 = vmul.f32 %v1974_v56, %v1844_v54 }
 0x25a   :  { %1807 = vperm.xlu1 %1970, %v1802_v57   ;;  %v1803_v59 = vmul.f32 %v1802_v57, %v1795_v45 }
 0x25c   :  { %v1804_v34 = vsub.f32 %v1845_v58, %v1803_v59 }
 0x25e   :  { %1814 = vperm.xlu0 %1969, %v1804_v34  }
 0x2d9   :  { %v1808_v60 = vpop.permute.xlu1 %1807 }
 0x2da   :  { %v1810_v61 = vmul.f32 %v1808_v60, %v940_v28  ;;  %v1811_v35 = vmul.f32 %v1808_v60, %v941_v29  ;;  %v1821_v62 = vmul.f32 %v1808_v60, %v1783_v55  ;;  %v1822_v63 = vmul.f32 %v1808_v60, %v1784_v30 }
 0x2dd   :  { %v1815_v0 = vpop.permute.xlu0 %1814 }
 0x2de   :  { %v1817_v1 = vadd.f32 %v1815_v0, %v1810_v61  ;;  %v1818_v2 = vadd.f32 %v1815_v0, %v1811_v35  ;;  %v1823_v3 = vadd.f32 %v1821_v62, %v1815_v0  ;;  %v1824_v4 = vadd.f32 %v1822_v63, %v1815_v0 }
 0x2e0   :  { %1819 = vst [vmem:[#allocation2] sm:$0xff] %v1817_v1  ;;  %1820 = vst [vmem:[#allocation2 + $0x8] sm:$0xff] %v1818_v2 }
 0x2e1   :  { %1826 = vst [vmem:[#allocation2 + $0x10] sm:$0xff] %v1823_v3  ;;  %1827 = vst [vmem:[#allocation2 + $0x18] sm:$0xff] %v1824_v4 }
 0x2e2   :  { %1986 = shalt.err (!%p1983_p4)
}
 0x2e3   :  { %s1987_s28 = scalar_lea.hbm %s2353_s3, 512 }
 0x2e4   :  { %p1988_p5 = scmp.ne.s32.totalorder %s2353_s3, %s1987_s28  ;;  %p1991_p6 = scmp.lt.u32.totalorder %s1987_s28, %s2353_s3 }
 0x2e6   :  { %p1993_p7 = pnand %p1991_p6, %p1988_p5 }
 0x2e8   :  { %1996 = shalt.err (!%p1993_p7)
}
 0x2e9   :  { %s2010_s5 = smov 256   ;;  %s2011_s6 = smov 16  }
 0x2ea   :  { %1839 = dma.vmem_to_hbm [thread:$0]  %s1834_s25, 512, %s2353_s3, [#allocation3], %s2010_s5, %s2010_s5, %s2011_s6  }
 0x2eb   :  { %1997 = dma.done.wait [#allocation3], 512  }
 0x2ec   :  { %1998 = vsyncadd [#allocation3], 4294966784 }
 0x2ed   :  { %1843 = vsyncpa [#allocation3], 1 }

</bundles_post_ra>
